<compile_context>
chip_gen: v7x
topology: tpu7x:2x2x1
jax: 0.10.0
libtpu: 0.0.40
codegen_flags: <defaults>
</compile_context>

<pallas_src>
import functools

import jax
import jax.numpy as jnp
from jax.experimental import pallas as pl
from jax.experimental.pallas import tpu as pltpu


def _gradloss_kernel(x1_ref, x2_ref, out_ref, *, h, w):
    """One row-tile: partial sum of squared Laplacian of (img1 - img2).

    x1_ref / x2_ref: (tile_rows, H*W) blocks in VMEM (one row == one image).
    out_ref: (1, 1) f32 partial sum in SMEM for this grid step.
    """
    hw = h * w
    f32 = jnp.float32
    d = x1_ref[...].astype(f32) - x2_ref[...].astype(f32)        # (tb, hw)
    tb = d.shape[0]

    zero_col = jnp.zeros((tb, 1), f32)
    zero_row = jnp.zeros((tb, w), f32)

    # Shifted neighbours along the flattened H*W axis.  Zero-fill at the ends
    # is exactly the conv2d zero padding for the +/-W (vertical) shifts.
    left = jnp.concatenate([zero_col, d[:, : hw - 1]], axis=1)    # d[k-1]
    right = jnp.concatenate([d[:, 1:], zero_col], axis=1)         # d[k+1]
    up = jnp.concatenate([zero_row, d[:, : hw - w]], axis=1)      # d[k-w]
    down = jnp.concatenate([d[:, w:], zero_row], axis=1)          # d[k+w]

    # The +/-1 shifts leak across image-row boundaries of the flattened axis:
    # mask with the in-row column index (== zero padding at x=0 / x=w-1).
    col = jax.lax.broadcasted_iota(jnp.int32, d.shape, 1) % w
    left = jnp.where(col == 0, 0.0, left)
    right = jnp.where(col == w - 1, 0.0, right)

    lap = (up + down + left + right) - 4.0 * d
    out_ref[0, 0] = jnp.sum(lap * lap)


def grad_loss(img1, img2):
    """Pallas implementation of GradLoss.forward. img1/img2: (B, C, H, W)."""
    assert img1.shape == img2.shape
    b, c, h, w = img1.shape
    n = b * c
    hw = h * w

    # Lane-dense 2-D view: one image per row, H*W along the lane axis.
    # Contiguous reshape -> no HBM copy, no padding, no dtype cast.
    x1 = img1.reshape(n, hw)
    x2 = img2.reshape(n, hw)

    # Row-tile size: keep one input tile <= ~2 MiB so
    # 2 inputs x 2 pipeline buffers + in-kernel temporaries stay well inside
    # v7x's 64 MiB physical VMEM (and the raised scoped limit below).
    itemsize = jnp.dtype(img1.dtype).itemsize
    row_bytes = hw * itemsize
    budget = 2 * 1024 * 1024
    tb = max(1, budget // row_bytes)
    if tb >= n:
        tb = n
        rows_pad = 0
    else:
        tb = max(8, (tb // 8) * 8)      # sublane-aligned row tile
        rows_pad = (-n) % tb            # zero rows contribute 0 to the sum
    if rows_pad:
        x1 = jnp.pad(x1, ((0, rows_pad), (0, 0)))
        x2 = jnp.pad(x2, ((0, rows_pad), (0, 0)))
    num_tiles = (n + rows_pad) // tb
    # TODO(synk): for very large spatial sizes (row_bytes >> budget) also tile
    # along H with a 1-row halo instead of loading a whole image per row.

    kernel = functools.partial(_gradloss_kernel, h=h, w=w)

    partials = pl.pallas_call(
        kernel,
        out_shape=jax.ShapeDtypeStruct((num_tiles, 1), jnp.float32),
        grid=(num_tiles,),
        in_specs=[
            pl.BlockSpec((tb, hw), lambda i: (i, 0)),
            pl.BlockSpec((tb, hw), lambda i: (i, 0)),
        ],
        out_specs=pl.BlockSpec(
            (1, 1), lambda i: (i, 0), memory_space=pltpu.MemorySpace.SMEM
        ),
        compiler_params=pltpu.CompilerParams(
            dimension_semantics=("parallel",),
            vmem_limit_bytes=48 * 1024 * 1024,
        ),
    )(x1, x2)

    # Tiny final tree-reduction + mean in plain JAX (true element count,
    # so padded rows never mis-weight the mean).
    return jnp.sum(partials) / jnp.float32(n * hw)


def _grad_loss_ref(img1, img2):
    """Pure-JAX reference for validation (matches the PyTorch module)."""
    def laplacian(x):
        p = jnp.pad(x, ((0, 0), (0, 0), (1, 1), (1, 1)))
        return (p[:, :, 0:-2, 1:-1] + p[:, :, 2:, 1:-1] +
                p[:, :, 1:-1, 0:-2] + p[:, :, 1:-1, 2:] -
                4.0 * p[:, :, 1:-1, 1:-1])
    d = laplacian(img1) - laplacian(img2)
    return jnp.mean(d * d)


if __name__ == "__main__":
    key = jax.random.PRNGKey(0)
    k1, k2 = jax.random.split(key)
    B, C, H, W = 2, 4, 16, 16
    img1 = jax.random.normal(k1, (B, C, H, W), dtype=jnp.float32)
    img2 = jax.random.normal(k2, (B, C, H, W), dtype=jnp.float32)

    loss = jax.block_until_ready(grad_loss(img1, img2))
    ref = jax.block_until_ready(_grad_loss_ref(img1, img2))

    assert jnp.allclose(loss, ref, rtol=1e-5, atol=1e-5), (loss, ref)
    print("KERNEL_OK")
</pallas_src>

<mosaic_0001>
module attributes {stable_mosaic.version = 11 : i64} {
  func.func @_gradloss_kernel(%arg0: i32, %arg1: memref<8x256xf32, #tpu.memory_space<vmem>>, %arg2: memref<8x256xf32, #tpu.memory_space<vmem>>, %arg3: memref<1x1xf32, #tpu.memory_space<smem>>) attributes {dimension_semantics = [#tpu.dimension_semantics<parallel>], iteration_bounds = array<i64: 1>, scalar_prefetch = 0 : i64, scratch_operands = 0 : i64, tpu.core_type = #tpu.core_type<tc>, window_params = [{transform_indices = @transform_0, window_bounds = array<i64: 8, 256>}, {transform_indices = @transform_1, window_bounds = array<i64: 8, 256>}, {transform_indices = @transform_2, window_bounds = array<i64: 1, 1>}]} {
    %c0 = arith.constant 0 : index
    %c0_0 = arith.constant 0 : index
    %0 = vector.load %arg1[%c0, %c0_0] : memref<8x256xf32, #tpu.memory_space<vmem>>, vector<8x256xf32>
    %c0_1 = arith.constant 0 : index
    %c0_2 = arith.constant 0 : index
    %1 = vector.load %arg2[%c0_1, %c0_2] : memref<8x256xf32, #tpu.memory_space<vmem>>, vector<8x256xf32>
    %2 = arith.subf %0, %1 : vector<8x256xf32>
    %cst = arith.constant 0.000000e+00 : f32
    %3 = vector.broadcast %cst : f32 to vector<8x1xf32>
    %cst_3 = arith.constant 0.000000e+00 : f32
    %4 = vector.broadcast %cst_3 : f32 to vector<8x16xf32>
    %5 = vector.extract_strided_slice %2 {offsets = [0, 0], sizes = [8, 255], strides = [1, 1]} : vector<8x256xf32> to vector<8x255xf32>
    %6 = tpu.concatenate %3, %5 in 1 : vector<8x1xf32>, vector<8x255xf32> -> vector<8x256xf32>
    %7 = vector.extract_strided_slice %2 {offsets = [0, 1], sizes = [8, 255], strides = [1, 1]} : vector<8x256xf32> to vector<8x255xf32>
    %8 = tpu.concatenate %7, %3 in 1 : vector<8x255xf32>, vector<8x1xf32> -> vector<8x256xf32>
    %9 = vector.extract_strided_slice %2 {offsets = [0, 0], sizes = [8, 240], strides = [1, 1]} : vector<8x256xf32> to vector<8x240xf32>
    %10 = tpu.concatenate %4, %9 in 1 : vector<8x16xf32>, vector<8x240xf32> -> vector<8x256xf32>
    %11 = vector.extract_strided_slice %2 {offsets = [0, 16], sizes = [8, 240], strides = [1, 1]} : vector<8x256xf32> to vector<8x240xf32>
    %12 = tpu.concatenate %11, %4 in 1 : vector<8x240xf32>, vector<8x16xf32> -> vector<8x256xf32>
    %13 = tpu.iota {dimensions = array<i32: 1>} : vector<8x256xi32>
    %c16_i32 = arith.constant 16 : i32
    %c0_i32 = arith.constant 0 : i32
    %14 = arith.cmpi eq, %c16_i32, %c0_i32 : i32
    %c1_i32 = arith.constant 1 : i32
    %15 = arith.select %14, %c1_i32, %c16_i32 : i32
    %16 = vector.broadcast %15 : i32 to vector<8x256xi32>
    %17 = arith.remsi %13, %16 : vector<8x256xi32>
    %c0_i32_4 = arith.constant 0 : i32
    %18 = vector.broadcast %c0_i32_4 : i32 to vector<8x256xi32>
    %19 = arith.cmpi ne, %17, %18 : vector<8x256xi32>
    %c0_i32_5 = arith.constant 0 : i32
    %20 = vector.broadcast %c0_i32_5 : i32 to vector<8x256xi32>
    %21 = arith.cmpi slt, %17, %20 : vector<8x256xi32>
    %c0_i32_6 = arith.constant 0 : i32
    %22 = arith.cmpi slt, %15, %c0_i32_6 : i32
    %23 = vector.broadcast %22 : i1 to vector<8x256xi1>
    %24 = vector.broadcast %23 : vector<8x256xi1> to vector<8x256xi1>
    %25 = arith.xori %21, %24 : vector<8x256xi1>
    %26 = arith.andi %25, %19 : vector<8x256xi1>
    %27 = vector.broadcast %15 : i32 to vector<8x256xi32>
    %28 = arith.addi %17, %27 : vector<8x256xi32>
    %29 = arith.select %26, %28, %17 : vector<8x256xi1>, vector<8x256xi32>
    %c0_i32_7 = arith.constant 0 : i32
    %30 = vector.broadcast %c0_i32_7 : i32 to vector<8x256xi32>
    %31 = arith.cmpi eq, %29, %30 : vector<8x256xi32>
    %cst_8 = arith.constant 0.000000e+00 : f32
    %32 = vector.broadcast %cst_8 : f32 to vector<8x256xf32>
    %33 = arith.select %31, %32, %6 : vector<8x256xi1>, vector<8x256xf32>
    %c15_i32 = arith.constant 15 : i32
    %34 = vector.broadcast %c15_i32 : i32 to vector<8x256xi32>
    %35 = arith.cmpi eq, %29, %34 : vector<8x256xi32>
    %cst_9 = arith.constant 0.000000e+00 : f32
    %36 = vector.broadcast %cst_9 : f32 to vector<8x256xf32>
    %37 = arith.select %35, %36, %8 : vector<8x256xi1>, vector<8x256xf32>
    %38 = arith.addf %10, %12 : vector<8x256xf32>
    %39 = arith.addf %38, %33 : vector<8x256xf32>
    %40 = arith.addf %39, %37 : vector<8x256xf32>
    %cst_10 = arith.constant 4.000000e+00 : f32
    %41 = vector.broadcast %cst_10 : f32 to vector<8x256xf32>
    %42 = arith.mulf %41, %2 : vector<8x256xf32>
    %43 = arith.subf %40, %42 : vector<8x256xf32>
    %44 = arith.mulf %43, %43 : vector<8x256xf32>
    %45 = vector.shape_cast %44 : vector<8x256xf32> to vector<1x8x256xf32>
    %cst_11 = arith.constant dense<0.000000e+00> : vector<1xf32>
    %46 = vector.multi_reduction <add>, %45, %cst_11 [1, 2] : vector<1x8x256xf32> to vector<1xf32>
    %47 = vector.shape_cast %46 : vector<1xf32> to vector<1x1x1xf32>
    %48 = vector.extract %47[0, 0, 0] : f32 from vector<1x1x1xf32>
    %c0_12 = arith.constant 0 : index
    %c0_13 = arith.constant 0 : index
    %49 = memref.load %arg3[%c0_12, %c0_13] : memref<1x1xf32, #tpu.memory_space<smem>>
    memref.store %48, %arg3[%c0_12, %c0_13] : memref<1x1xf32, #tpu.memory_space<smem>>
    return
  }
  func.func @transform_0(%arg0: i32) -> (i32, i32) {
    %c0_i32 = arith.constant 0 : i32
    %c0_i32_0 = arith.constant 0 : i32
    return %arg0, %c0_i32 : i32, i32
  }
  func.func @transform_1(%arg0: i32) -> (i32, i32) {
    %c0_i32 = arith.constant 0 : i32
    %c0_i32_0 = arith.constant 0 : i32
    return %arg0, %c0_i32 : i32, i32
  }
  func.func @transform_2(%arg0: i32) -> (i32, i32) {
    %c0_i32 = arith.constant 0 : i32
    %c0_i32_0 = arith.constant 0 : i32
    return %arg0, %c0_i32 : i32, i32
  }
}

</mosaic_0001>

<bundles_post_ra>
// kernel: tpu_custom_call.1
= control target key start
LH: loop header
LB: loop body
LE: loop exit
PB: predicated region body
PF: predicated region fallthrough
CT: control target
= control target key end

     0   :  { %7 = vsyncpa [#allocation3], 0  ;;  %s293_s0 = inlined_call_operand.hbm [shape: f32[8,256], index: 0, kind: input, shape index: {}]   ;;  %s294_s1 = inlined_call_operand.hbm [shape: f32[8,256], index: 1, kind: input, shape index: {}]   ;;  %s295_s2 = inlined_call_operand.hbm [shape: f32[1,1], index: 2, kind: output, shape index: {}]  }
   0x1   :  { %8 = vsyncpa [#allocation6], 0 }
   0x2   :  { %9 = vsyncpa [#allocation4], 0  ;;  %s223_s9 = smov [#allocation2]   ;;  %s224_s11 = smov [#allocation5]  }
   0x3   :  { %s16_s10 = sshll.u32 %s223_s9, 4  ;;  %s26_s12 = sshll.u32 %s224_s11, 4  ;;  %s17_s10 = int_to_ptr.vmem [resolvable:$true] %s16_s10  ;;  %s27_s12 = int_to_ptr.vmem [resolvable:$true] %s26_s12 }
   0x4   :  { %s163_s15 = scalar_lea.hbm %s293_s0, 256 }
   0x5   :  { %p164_p0 = scmp.ne.s32.totalorder %s293_s0, %s163_s15  ;;  %p167_p1 = scmp.lt.u32.totalorder %s163_s15, %s293_s0 }
   0x7   :  { %p169_p2 = pnand %p167_p1, %p164_p0 }
   0x9   :  { %172 = shalt.err (!%p169_p2)
}
   0xa   :  { %s173_s20 = scalar_lea.vmem %s17_s10, 256  ;;  %p178_p4 = scmp.lt.s32.totalorder %s17_s10, %s17_s10 }
   0xb   :  { %p174_p3 = scmp.ne.s32.totalorder %s17_s10, %s173_s20  ;;  %p179_p5 = scmp.lt.s32.totalorder %s173_s20, %s173_s20 }
   0xd   :  { %p180_p6 = por %p179_p5, %p178_p4 }
   0xf   :  { %p181_p7 = pnand %p180_p6, %p174_p3 }
  0x11   :  { %184 = shalt.err (!%p181_p7)
}
  0x12   :  { %19 = dma.hbm_to_vmem [thread:$0]  %s293_s0, 256, %s17_s10, [#allocation3]  }
  0x13   :  { %s185_s25 = scalar_lea.hbm %s294_s1, 256 }
  0x14   :  { %p186_p8 = scmp.ne.s32.totalorder %s294_s1, %s185_s25  ;;  %p189_p9 = scmp.lt.u32.totalorder %s185_s25, %s294_s1 }
  0x16   :  { %p191_p10 = pnand %p189_p9, %p186_p8 }
  0x18   :  { %194 = shalt.err (!%p191_p10)
}
  0x19   :  { %s195_s30 = scalar_lea.vmem %s27_s12, 256  ;;  %p200_p12 = scmp.lt.s32.totalorder %s27_s12, %s27_s12 }
  0x1a   :  { %p196_p11 = scmp.ne.s32.totalorder %s27_s12, %s195_s30  ;;  %p201_p13 = scmp.lt.s32.totalorder %s195_s30, %s195_s30 }
  0x1c   :  { %p202_p0 = por %p201_p13, %p200_p12 }
  0x1e   :  { %p203_p1 = pnand %p202_p0, %p196_p11 }
  0x20   :  { %206 = shalt.err (!%p203_p1)
}
  0x21   :  { %29 = dma.hbm_to_vmem [thread:$0]  %s294_s1, 256, %s27_s12, [#allocation6]  }
  0x22   :  { %217 = dma.done.wait [#allocation3], 256  }
  0x23   :  { %218 = vsyncadd [#allocation3], 4294967040 }
  0x24   :  { %219 = dma.done.wait [#allocation6], 256  }
  0x25   :  { %220 = vsyncadd [#allocation6], 4294967040  ;;  %v36_v0 = vld [vmem:[#allocation2] sm:$0xff]  ;;  %v38_v1 = vld [vmem:[#allocation5] sm:$0xff]  ;;  %s225_s4 = smov 112   ;;  %s226_s5 = smov 16   ;;  %v80_v6 = vlaneseq }
  0x26   :  { %v37_v2 = vld [vmem:[#allocation2 + $0x8] sm:$0xff]  ;;  %v40_v3 = vsub.f32 %v36_v0, %v38_v1  ;;  %v39_v4 = vld [vmem:[#allocation5 + $0x8] sm:$0xff]  ;;  %s227_s6 = smov 1   ;;  %s228_s1 = smov 127   ;;  %vm75_vm0 = vcmask 916480   ;;  %vm48_vm1 = vcmask 7168  }
  0x27   :  { %v41_v5 = vsub.f32 %v37_v2, %v39_v4  ;;  %v81_v7 = vand.u32 127, %v80_v6  ;;  %vm66_vm2 = vcmask 130048   ;;  %vm57_vm5 = vcmask 1039360   ;;  %s207_s10 = scalar_lea.hbm %s295_s2, 16 }
  0x28   :  { %71 = vrot.lane.b32.xlu1 %v40_v3, %s225_s4  ;;  %62 = vrot.lane.b32.xlu0 %v40_v3, %s226_s5  ;;  %v121_v31 = vmul.f32 4.0, %v40_v3  ;;  %p208_p2 = scmp.ne.s32.totalorder %s295_s2, %s207_s10  ;;  %p211_p3 = scmp.lt.u32.totalorder %s207_s10, %s295_s2 }
  0x29   :  { %v82_v8 = vadd.s32 128, %v81_v7  ;;  %v87_v11 = vand.u32 15, %v81_v7  ;;  %v122_v32 = vmul.f32 4.0, %v41_v5 }
  0x2a   :  { %p213_p4 = pnand %p211_p3, %p208_p2 }
  0x2b   :  { %v94_v12 = vand.u32 15, %v82_v8  ;;  %vm269_vm3 = vcmp.eq.s32.totalorder %v87_v11, 0  ;;  %vm111_vm7 = vcmp.eq.s32.totalorder %v87_v11, 15 }
  0x2c   :  { %73 = vrot.lane.b32.xlu1 %v41_v5, %s225_s4  ;;  %64 = vrot.lane.b32.xlu0 %v41_v5, %s226_s5 }
  0x2d   :  { %vm273_vm4 = vcmp.eq.s32.totalorder %v94_v12, 0  ;;  %vm112_vm6 = vcmp.eq.s32.totalorder %v94_v12, 15 }
  0x30   :  { %46 = vrot.lane.b32.xlu1 %v41_v5, %s227_s6  ;;  %44 = vrot.lane.b32.xlu0 %v40_v3, %s227_s6 }
  0x34   :  { %55 = vrot.lane.b32.xlu1 %v41_v5, %s228_s1  ;;  %53 = vrot.lane.b32.xlu0 %v40_v3, %s228_s1 }
  0x9a   :  { %v72_v9 = vpop.permute.xlu1 %71  ;;  %v63_v10 = vpop.permute.xlu0 %62 }
  0x9b   :  { %v70_v24 = vsel %vm66_vm2, 0.0, %v63_v10 }
  0x9e   :  { %v74_v13 = vpop.permute.xlu1 %73  ;;  %v65_v14 = vpop.permute.xlu0 %64 }
  0x9f   :  { %v76_v17 = vsel %vm75_vm0, %v72_v9, %v74_v13  ;;  %v79_v18 = vsel %vm75_vm0, %v74_v13, 0.0  ;;  %v67_v19 = vsel %vm66_vm2, %v63_v10, %v65_v14 }
  0xa0   :  { %v115_v27 = vadd.f32 %v76_v17, %v70_v24  ;;  %v116_v28 = vadd.f32 %v79_v18, %v67_v19 }
  0xa2   :  { %v47_v20 = vpop.permute.xlu1 %46  ;;  %v45_v21 = vpop.permute.xlu0 %44 }
  0xa3   :  { %v49_v22 = vsel %vm48_vm1, %v45_v21, %v47_v20  ;;  %v52_v23 = vsel %vm48_vm1, 0.0, %v45_v21 }
  0xa4   :  { %v109_v25 = vsel %vm269_vm3, 0.0, %v52_v23  ;;  %v110_v26 = vsel %vm273_vm4, 0.0, %v49_v22 }
  0xa5   :  { %v117_v33 = vadd.f32 %v115_v27, %v109_v25  ;;  %v118_v34 = vadd.f32 %v116_v28, %v110_v26 }
  0xa6   :  { %v56_v29 = vpop.permute.xlu1 %55  ;;  %v54_v30 = vpop.permute.xlu0 %53 }
  0xa7   :  { %v61_v35 = vsel %vm57_vm5, %v56_v29, 0.0  ;;  %v58_v36 = vsel %vm57_vm5, %v54_v30, %v56_v29 }
  0xa8   :  { %v114_v37 = vsel %vm112_vm6, 0.0, %v61_v35  ;;  %v113_v38 = vsel %vm111_vm7, 0.0, %v58_v36 }
  0xa9   :  { %v120_v39 = vadd.f32 %v118_v34, %v114_v37  ;;  %v119_v40 = vadd.f32 %v117_v33, %v113_v38 }
  0xab   :  { %v123_v41 = vsub.f32 %v119_v40, %v121_v31  ;;  %v124_v42 = vsub.f32 %v120_v39, %v122_v32 }
  0xad   :  { %v125_v43 = vmul.f32 %v123_v41, %v123_v41  ;;  %v126_v44 = vmul.f32 %v124_v42, %v124_v42 }
  0xaf   :  { %v127_v45 = vadd.f32 %v126_v44, %v125_v43 }
  0xb1   :  { %128 = vadd.xlane.f32.xlu0 %v127_v45 }
 0x13e   :  { %v129_v46 = vpop.xlane.xlu0 %128 }
 0x13f   :  { %v130_v47 = vrot.slane %v129_v46, 4 }
 0x141   :  { %v131_v48 = vadd.f32 %v130_v47, %v129_v46 }
 0x143   :  { %v132_v49 = vrot.slane %v131_v48, 2 }
 0x145   :  { %v133_v50 = vadd.f32 %v132_v49, %v131_v48 }
 0x147   :  { %v134_v51 = vrot.slane %v133_v50, 1 }
 0x149   :  { %v135_v52 = vadd.f32 %v134_v51, %v133_v50 }
 0x14b   :  { %154 = vpush %v135_v52 }
 0x17c   :  { %s155_s7 = spop %154 }
 0x17d   :  { %138 = sst [smem:[#allocation7]] %s155_s7 }
 0x17e   :  { %216 = shalt.err (!%p213_p4)
}
 0x17f   :  { %s229_s15 = smov [#allocation7]  }
 0x180   :  { %146 = dma.smem_to_hbm %s229_s15, 16, %s295_s2, [#allocation4]  }
 0x181   :  { %221 = dma.done.wait [#allocation4], 16  }
 0x182   :  { %222 = vsyncadd [#allocation4], 4294967280 }
 0x183   :  { %150 = sfence }
 0x184   :  { %151 = vsyncpa [#allocation3], 1 }
 0x185   :  { %152 = vsyncpa [#allocation6], 1 }
 0x186   :  { %153 = vsyncpa [#allocation4], 1 }

</bundles_post_ra>
